<compile_context>
chip_gen: v7x
topology: tpu7x:2x2x1
jax: 0.10.0
libtpu: 0.0.40
codegen_flags: <defaults>
</compile_context>

<pallas_src>
import functools

import jax
import jax.numpy as jnp
from jax.experimental import pallas as pl
from jax.experimental.pallas import tpu as pltpu


def _critic_kernel(
    s_ref, a_ref,
    w13_ref, b13_ref,       # fused fc1 | fc3
    w24_ref,                # block-diagonal fc2.T / fc4.T (no bias, matches torch.mm)
    wa_ref, ba_ref,         # fused action_1_value | action_2_value
    wq_ref, bq_ref,         # fused q1 | q2 rows and biases
    q_ref,                  # (B, 2) output: column 0 = q1, column 1 = q2
    *, f2,
):
    s = s_ref[...]                       # (B, D)
    a = a_ref[...]                       # (B, A)

    # Layer 1, both heads at once: h = [h1 | h3], (B, 2*F1) -> 128 lanes when F1=64.
    h = jnp.maximum(
        jnp.dot(s, w13_ref[...], preferred_element_type=jnp.float32) + b13_ref[...],
        0.0,
    )

    # Layer 2, both heads at once: block-diag state path + fused action path.
    z = (
        jnp.dot(h, w24_ref[...], preferred_element_type=jnp.float32)
        + jnp.dot(a, wa_ref[...], preferred_element_type=jnp.float32)
        + ba_ref[...]
    )
    sa = jnp.maximum(z, 0.0)             # (B, 2*F2) = [sa1 | sa2]

    # Final N=1 heads as VPU multiply + cross-lane reduce (no N=1 MXU matmuls).
    prod = sa * wq_ref[...]              # (B, 2*F2), wq = [wq1_row | wq2_row]
    bq = bq_ref[...]                     # (1, 2)
    q_ref[:, 0:1] = jnp.sum(prod[:, :f2], axis=-1, keepdims=True) + bq[:, 0:1]
    q_ref[:, 1:2] = jnp.sum(prod[:, f2:], axis=-1, keepdims=True) + bq[:, 1:2]


def prepare_params(p):
    """One-time packing of PyTorch-layout params into kernel-ready arrays.

    Called ONCE at load time (hoisted out of the per-step hot path).
    PyTorch layout: weights (out, in), biases (out,).
    """
    f32 = jnp.float32
    w1 = jnp.asarray(p["w1"], f32)       # (F1, D)
    w3 = jnp.asarray(p["w3"], f32)       # (F1, D)
    w2 = jnp.asarray(p["w2"], f32)       # (F2, F1)
    w4 = jnp.asarray(p["w4"], f32)       # (F2, F1)
    wa1 = jnp.asarray(p["wa1"], f32)     # (F2, A)
    wa2 = jnp.asarray(p["wa2"], f32)     # (F2, A)
    wq1 = jnp.asarray(p["wq1"], f32)     # (1, F2)
    wq2 = jnp.asarray(p["wq2"], f32)     # (1, F2)
    f1 = w1.shape[0]
    f2 = w2.shape[0]

    # Fused fc1|fc3: (D, 2*F1)
    w13 = jnp.concatenate([w1.T, w3.T], axis=1)
    b13 = jnp.concatenate(
        [jnp.asarray(p["b1"], f32), jnp.asarray(p["b3"], f32)]
    ).reshape(1, 2 * f1)

    # Block-diagonal fc2.T / fc4.T: (2*F1, 2*F2); zeros keep heads independent.
    w24 = jnp.zeros((2 * f1, 2 * f2), f32)
    w24 = w24.at[:f1, :f2].set(w2.T).at[f1:, f2:].set(w4.T)

    # Fused action layers: (A, 2*F2)
    wa = jnp.concatenate([wa1.T, wa2.T], axis=1)
    ba = jnp.concatenate(
        [jnp.asarray(p["ba1"], f32), jnp.asarray(p["ba2"], f32)]
    ).reshape(1, 2 * f2)

    # Fused q heads as a single row: (1, 2*F2); biases: (1, 2)
    wq = jnp.concatenate([wq1.reshape(-1), wq2.reshape(-1)]).reshape(1, 2 * f2)
    bq = jnp.concatenate(
        [jnp.asarray(p["bq1"], f32), jnp.asarray(p["bq2"], f32)]
    ).reshape(1, 2)

    return {"w13": w13, "b13": b13, "w24": w24, "wa": wa, "ba": ba,
            "wq": wq, "bq": bq}


def critic_forward(state, action, packed):
    """Pallas implementation of CriticNetwork.forward using pre-packed params.

    Returns (q1, q2), each squeezed like torch's .squeeze().
    """
    B = state.shape[0]
    A = packed["wa"].shape[0]
    f2 = packed["wa"].shape[1] // 2

    s = state.reshape(B, -1).astype(jnp.float32)          # flatten
    a = action.reshape(-1, A).astype(jnp.float32)         # action.view(-1, n_actions)

    kernel = functools.partial(_critic_kernel, f2=f2)
    vmem = pl.BlockSpec(memory_space=pltpu.MemorySpace.VMEM)

    q = pl.pallas_call(
        kernel,
        out_shape=jax.ShapeDtypeStruct((B, 2), jnp.float32),
        in_specs=[vmem] * 9,
        out_specs=vmem,
    )(s, a, packed["w13"], packed["b13"], packed["w24"],
      packed["wa"], packed["ba"], packed["wq"], packed["bq"])

    return jnp.squeeze(q[:, 0]), jnp.squeeze(q[:, 1])


def init_params(key, input_dims, fc1_dims, fc2_dims, n_actions):
    """Deterministic init matching the nn.Linear shapes (PyTorch layout: (out, in))."""
    keys = jax.random.split(key, 16)

    def linear(kw, kb, fan_in, fan_out):
        bound = 1.0 / jnp.sqrt(fan_in)
        w = jax.random.uniform(kw, (fan_out, fan_in), jnp.float32, -bound, bound)
        bias = jax.random.uniform(kb, (fan_out,), jnp.float32, -bound, bound)
        return w, bias

    p = {}
    p["w1"], p["b1"] = linear(keys[0], keys[1], input_dims, fc1_dims)
    p["w2"], p["b2"] = linear(keys[2], keys[3], fc1_dims, fc2_dims)
    p["wa1"], p["ba1"] = linear(keys[4], keys[5], n_actions, fc2_dims)
    p["wq1"], p["bq1"] = linear(keys[6], keys[7], fc2_dims, 1)
    p["w3"], p["b3"] = linear(keys[8], keys[9], input_dims, fc1_dims)
    p["w4"], p["b4"] = linear(keys[10], keys[11], fc1_dims, fc2_dims)
    p["wa2"], p["ba2"] = linear(keys[12], keys[13], n_actions, fc2_dims)
    p["wq2"], p["bq2"] = linear(keys[14], keys[15], fc2_dims, 1)
    return p


def _reference(state, action, p):
    """Plain-JAX reference mirroring the PyTorch forward, for verification."""
    B = state.shape[0]
    n_actions = p["wa1"].shape[1]        # (out=fc2_dims, in=n_actions)
    s = state.reshape(B, -1)
    a = action.reshape(-1, n_actions)
    relu = lambda x: jnp.maximum(x, 0.0)
    h1 = relu(s @ p["w1"].T + p["b1"])
    sa1 = relu(h1 @ p["w2"].T + a @ p["wa1"].T + p["ba1"])   # fc2 bias intentionally omitted
    q1 = sa1 @ p["wq1"].T + p["bq1"]
    h3 = relu(s @ p["w3"].T + p["b3"])
    sa2 = relu(h3 @ p["w4"].T + a @ p["wa2"].T + p["ba2"])   # fc4 bias intentionally omitted
    q2 = sa2 @ p["wq2"].T + p["bq2"]
    return jnp.squeeze(q1), jnp.squeeze(q2)


if __name__ == "__main__":
    # Small shapes consistent with the module's forward:
    #   state: (B, C, L) flattened to input_dims = C * L
    #   action: (B, n_actions)
    B, C, L = 8, 4, 8
    input_dims = C * L          # 32
    fc1_dims, fc2_dims = 64, 32  # 2*fc1_dims = 128 -> lane-dense fused hidden
    n_actions = 8

    key = jax.random.PRNGKey(0)
    k_state, k_action, k_params = jax.random.split(key, 3)

    state = jax.random.normal(k_state, (B, C, L), jnp.float32)
    action = jax.random.normal(k_action, (B, n_actions), jnp.float32)
    params = init_params(k_params, input_dims, fc1_dims, fc2_dims, n_actions)

    # One-time packing (hoisted out of the hot path), then a jitted forward.
    packed = jax.block_until_ready(prepare_params(params))
    fwd = jax.jit(critic_forward)

    q1, q2 = fwd(state, action, packed)
    q1 = jax.block_until_ready(q1)
    q2 = jax.block_until_ready(q2)

    q1_ref, q2_ref = _reference(state, action, params)
    assert q1.shape == (B,) and q2.shape == (B,)
    assert jnp.allclose(q1, q1_ref, atol=1e-4, rtol=1e-4)
    assert jnp.allclose(q2, q2_ref, atol=1e-4, rtol=1e-4)

    print("KERNEL_OK")
</pallas_src>

<mosaic_0001>
module attributes {stable_mosaic.version = 11 : i64} {
  func.func @_critic_kernel(%arg0: memref<8x32xf32, #tpu.memory_space<vmem>>, %arg1: memref<8x8xf32, #tpu.memory_space<vmem>>, %arg2: memref<32x128xf32, #tpu.memory_space<vmem>>, %arg3: memref<1x128xf32, #tpu.memory_space<vmem>>, %arg4: memref<128x64xf32, #tpu.memory_space<vmem>>, %arg5: memref<8x64xf32, #tpu.memory_space<vmem>>, %arg6: memref<1x64xf32, #tpu.memory_space<vmem>>, %arg7: memref<1x64xf32, #tpu.memory_space<vmem>>, %arg8: memref<1x2xf32, #tpu.memory_space<vmem>>, %arg9: memref<8x2xf32, #tpu.memory_space<vmem>>) attributes {dimension_semantics = [], scalar_prefetch = 0 : i64, scratch_operands = 0 : i64, tpu.core_type = #tpu.core_type<tc>} {
    %c0 = arith.constant 0 : index
    %c0_0 = arith.constant 0 : index
    %0 = vector.load %arg0[%c0, %c0_0] : memref<8x32xf32, #tpu.memory_space<vmem>>, vector<8x32xf32>
    %c0_1 = arith.constant 0 : index
    %c0_2 = arith.constant 0 : index
    %1 = vector.load %arg1[%c0_1, %c0_2] : memref<8x8xf32, #tpu.memory_space<vmem>>, vector<8x8xf32>
    %c0_3 = arith.constant 0 : index
    %c0_4 = arith.constant 0 : index
    %2 = vector.load %arg2[%c0_3, %c0_4] : memref<32x128xf32, #tpu.memory_space<vmem>>, vector<32x128xf32>
    %cst = arith.constant dense<0.000000e+00> : vector<8x128xf32>
    %3 = tpu.matmul %0, %2, %cst {dimension_numbers = #tpu.dot_dimension_numbers<[1], [0], [0], [1], [0, 0, 1, 1], [], []>} : vector<8x32xf32>, vector<32x128xf32>, vector<8x128xf32> -> vector<8x128xf32>
    %c0_5 = arith.constant 0 : index
    %c0_6 = arith.constant 0 : index
    %4 = vector.load %arg3[%c0_5, %c0_6] : memref<1x128xf32, #tpu.memory_space<vmem>>, vector<1x128xf32>
    %5 = vector.broadcast %4 : vector<1x128xf32> to vector<8x128xf32>
    %6 = arith.addf %3, %5 : vector<8x128xf32>
    %cst_7 = arith.constant 0.000000e+00 : f32
    %7 = vector.broadcast %cst_7 : f32 to vector<8x128xf32>
    %8 = arith.maximumf %6, %7 : vector<8x128xf32>
    %c0_8 = arith.constant 0 : index
    %c0_9 = arith.constant 0 : index
    %9 = vector.load %arg4[%c0_8, %c0_9] : memref<128x64xf32, #tpu.memory_space<vmem>>, vector<128x64xf32>
    %cst_10 = arith.constant dense<0.000000e+00> : vector<8x64xf32>
    %10 = tpu.matmul %8, %9, %cst_10 {dimension_numbers = #tpu.dot_dimension_numbers<[1], [0], [0], [1], [0, 0, 1, 1], [], []>} : vector<8x128xf32>, vector<128x64xf32>, vector<8x64xf32> -> vector<8x64xf32>
    %c0_11 = arith.constant 0 : index
    %c0_12 = arith.constant 0 : index
    %11 = vector.load %arg5[%c0_11, %c0_12] : memref<8x64xf32, #tpu.memory_space<vmem>>, vector<8x64xf32>
    %cst_13 = arith.constant dense<0.000000e+00> : vector<8x64xf32>
    %12 = tpu.matmul %1, %11, %cst_13 {dimension_numbers = #tpu.dot_dimension_numbers<[1], [0], [0], [1], [0, 0, 1, 1], [], []>} : vector<8x8xf32>, vector<8x64xf32>, vector<8x64xf32> -> vector<8x64xf32>
    %13 = arith.addf %10, %12 : vector<8x64xf32>
    %c0_14 = arith.constant 0 : index
    %c0_15 = arith.constant 0 : index
    %14 = vector.load %arg6[%c0_14, %c0_15] : memref<1x64xf32, #tpu.memory_space<vmem>>, vector<1x64xf32>
    %15 = vector.broadcast %14 : vector<1x64xf32> to vector<8x64xf32>
    %16 = arith.addf %13, %15 : vector<8x64xf32>
    %cst_16 = arith.constant 0.000000e+00 : f32
    %17 = vector.broadcast %cst_16 : f32 to vector<8x64xf32>
    %18 = arith.maximumf %16, %17 : vector<8x64xf32>
    %c0_17 = arith.constant 0 : index
    %c0_18 = arith.constant 0 : index
    %19 = vector.load %arg7[%c0_17, %c0_18] : memref<1x64xf32, #tpu.memory_space<vmem>>, vector<1x64xf32>
    %20 = vector.broadcast %19 : vector<1x64xf32> to vector<8x64xf32>
    %21 = arith.mulf %18, %20 : vector<8x64xf32>
    %c0_19 = arith.constant 0 : index
    %c0_20 = arith.constant 0 : index
    %22 = vector.load %arg8[%c0_19, %c0_20] : memref<1x2xf32, #tpu.memory_space<vmem>>, vector<1x2xf32>
    %23 = vector.extract_strided_slice %21 {offsets = [0, 0], sizes = [8, 32], strides = [1, 1]} : vector<8x64xf32> to vector<8x32xf32>
    %cst_21 = arith.constant dense<0.000000e+00> : vector<8xf32>
    %24 = vector.multi_reduction <add>, %23, %cst_21 [1] : vector<8x32xf32> to vector<8xf32>
    %25 = vector.shape_cast %24 : vector<8xf32> to vector<8x1xf32>
    %26 = vector.extract_strided_slice %22 {offsets = [0, 0], sizes = [1, 1], strides = [1, 1]} : vector<1x2xf32> to vector<1x1xf32>
    %27 = vector.broadcast %26 : vector<1x1xf32> to vector<8x1xf32>
    %28 = arith.addf %25, %27 : vector<8x1xf32>
    %c0_22 = arith.constant 0 : index
    %c0_23 = arith.constant 0 : index
    %29 = vector.load %arg9[%c0_22, %c0_23] : memref<8x2xf32, #tpu.memory_space<vmem>>, vector<8x1xf32>
    tpu.vector_store %arg9[%c0_22, %c0_23], %28 {strides = array<i32>} : memref<8x2xf32, #tpu.memory_space<vmem>>, vector<8x1xf32>,
    %30 = vector.extract_strided_slice %21 {offsets = [0, 32], sizes = [8, 32], strides = [1, 1]} : vector<8x64xf32> to vector<8x32xf32>
    %cst_24 = arith.constant dense<0.000000e+00> : vector<8xf32>
    %31 = vector.multi_reduction <add>, %30, %cst_24 [1] : vector<8x32xf32> to vector<8xf32>
    %32 = vector.shape_cast %31 : vector<8xf32> to vector<8x1xf32>
    %33 = vector.extract_strided_slice %22 {offsets = [0, 1], sizes = [1, 1], strides = [1, 1]} : vector<1x2xf32> to vector<1x1xf32>
    %34 = vector.broadcast %33 : vector<1x1xf32> to vector<8x1xf32>
    %35 = arith.addf %32, %34 : vector<8x1xf32>
    %c0_25 = arith.constant 0 : index
    %c1 = arith.constant 1 : index
    %36 = vector.load %arg9[%c0_25, %c1] : memref<8x2xf32, #tpu.memory_space<vmem>>, vector<8x1xf32>
    tpu.vector_store %arg9[%c0_25, %c1], %35 {strides = array<i32>} : memref<8x2xf32, #tpu.memory_space<vmem>>, vector<8x1xf32>,
    return
  }
}

</mosaic_0001>

<bundles_post_ra>
// kernel: critic_forward.1
= control target key start
LH: loop header
LB: loop body
LE: loop exit
PB: predicated region body
PF: predicated region fallthrough
CT: control target
= control target key end

     0   :  { %v440_v0 = vmov 0.0|0.0   ;;  %vm441_vm0 = vmmov 0   ;;  %v442_v4 = vmov 0.0   ;;  %vm45_vm1 = vcmask 261120   ;;  %s587_s2 = inlined_call_operand.vmem [shape: f32[32,128], index: 2, kind: input, shape index: {}]   ;;  %s588_s4 = inlined_call_operand.vmem [shape: f32[128,64], index: 4, kind: input, shape index: {}]   ;;  %s589_s0 = inlined_call_operand.vmem [shape: f32[8,32], index: 0, kind: input, shape index: {}]   ;;  %s590_s5 = inlined_call_operand.vmem [shape: f32[8,64], index: 5, kind: input, shape index: {}]   ;;  %s591_s1 = inlined_call_operand.vmem [shape: f32[8,8], index: 1, kind: input, shape index: {}]   ;;  %s592_s3 = inlined_call_operand.vmem [shape: f32[1,128], index: 3, kind: input, shape index: {}]   ;;  %s593_s6 = inlined_call_operand.vmem [shape: f32[1,64], index: 6, kind: input, shape index: {}]   ;;  %s594_s7 = inlined_call_operand.vmem [shape: f32[1,64], index: 7, kind: input, shape index: {}]   ;;  %s595_s8 = inlined_call_operand.vmem [shape: f32[1,2], index: 8, kind: input, shape index: {}]   ;;  %s596_s9 = inlined_call_operand.vmem [shape: f32[8,2], index: 9, kind: output, shape index: {}]  }
   0x1   :  { %406 = vmatprep.subr.bf16.mxu0 %v440_v0  ;;  %v34_v1 = vld [vmem:[%s587_s2] sm:$0xff]  ;;  %v35_v2 = vld [vmem:[%s587_s2 + $0x8] sm:$0xff]  ;;  %v36_v3 = vld [vmem:[%s587_s2 + $0x10] sm:$0xff]  ;;  %363 = vmatprep.mubr.msk.f32.mxu0 %vm441_vm0, %v442_v4  ;;  %vm137_vm2 = vcmask 64512   ;;  %vm309_vm3 = vcmask 7168   ;;  %vm319_vm4 = vcmask 15368  }
   0x2   :  { %v407_v5 = vpack.c.bf16 %v35_v2, %v34_v1  ;;  %v37_v6 = vld [vmem:[%s587_s2 + $0x18] sm:$0xff]  ;;  %412 = vmatprep.subr.bf16.mxu1 %v440_v0  ;;  %v120_v7 = vld [vmem:[%s588_s4] sm:$0xff]  ;;  %403 = vmatprep.mubr.msk.f32.mxu1 %vm441_vm0, %v442_v4  ;;  %v121_v8 = vld [vmem:[%s588_s4 + $0x8] sm:$0xff] }
   0x3   :  { %v122_v9 = vld [vmem:[%s588_s4 + $0x10] sm:$0xff]  ;;  %v123_v10 = vld [vmem:[%s588_s4 + $0x18] sm:$0xff]  ;;  %v410_v11 = vpack.c.bf16 %v37_v6, %v36_v3  ;;  %v413_v12 = vpack.c.bf16 %v121_v8, %v120_v7  ;;  %v124_v14 = vld [vmem:[%s588_s4 + $0x20] sm:$0xff] }
   0x4   :  { %408 = vmatpush3.bf16.msra.mxu0 %v407_v5  ;;  %v416_v13 = vpack.c.bf16 %v123_v10, %v122_v9  ;;  %v125_v15 = vld [vmem:[%s588_s4 + $0x28] sm:$0xff]  ;;  %v32_v16 = vld [vmem:[%s589_s0] sm:$0xff]  ;;  %v126_v18 = vld [vmem:[%s588_s4 + $0x30] sm:$0xff] }
   0x5   :  { %409 = vmatprep.subr.bf16.mxu0 %v440_v0  ;;  %414 = vmatpush3.bf16.msra.mxu1 %v413_v12  ;;  %v419_v17 = vpack.c.bf16 %v125_v15, %v124_v14  ;;  %v127_v19 = vld [vmem:[%s588_s4 + $0x38] sm:$0xff]  ;;  %v128_v21 = vld [vmem:[%s588_s4 + $0x40] sm:$0xff]  ;;  %v129_v22 = vld [vmem:[%s588_s4 + $0x48] sm:$0xff] }
   0x6   :  { %415 = vmatprep.subr.bf16.mxu1 %v440_v0  ;;  %v422_v20 = vpack.c.bf16 %v127_v19, %v126_v18  ;;  %v425_v23 = vpack.c.bf16 %v129_v22, %v128_v21  ;;  %v130_v24 = vld [vmem:[%s588_s4 + $0x50] sm:$0xff]  ;;  %v131_v25 = vld [vmem:[%s588_s4 + $0x58] sm:$0xff]  ;;  %v132_v27 = vld [vmem:[%s588_s4 + $0x60] sm:$0xff] }
   0x7   :  { %v428_v26 = vpack.c.bf16 %v131_v25, %v130_v24  ;;  %v133_v28 = vld [vmem:[%s588_s4 + $0x68] sm:$0xff]  ;;  %v134_v30 = vld [vmem:[%s588_s4 + $0x70] sm:$0xff]  ;;  %v135_v31 = vld [vmem:[%s588_s4 + $0x78] sm:$0xff] }
   0x8   :  { %411 = vmatpush3.bf16.msra.mxu0 %v410_v11  ;;  %v431_v29 = vpack.c.bf16 %v133_v28, %v132_v27  ;;  %v434_v32 = vpack.c.bf16 %v135_v31, %v134_v30  ;;  %v136_v33 = vld [vmem:[%s590_s5] sm:$0xff] }
   0x9   :  { %366 = vmatprep.subr.mxu0 %v442_v4  ;;  %417 = vmatpush3.bf16.msra.mxu1 %v416_v13  ;;  %v33_v34 = vld [vmem:[%s591_s1] sm:$0xff] }
   0xa   :  { %418 = vmatprep.subr.bf16.mxu1 %v440_v0  ;;  %v325_v35 = vld [vmem:[%s592_s3] ss:$0 sm:$0xff]  ;;  %s443_s3 = smov 96  }
   0xb   :  { %364 = vmatmul.mubr.msk.f32.vlgmr.msra.gmra.mrb[0].mxu0 %vm45_vm1, %v32_v16  ;;  %v328_v43 = vld [vmem:[%s593_s6] ss:$0 sm:$0xff] }
   0xc   :  { %368 = vmatprep.mubr.msk.f32.mxu0 %vm441_vm0, %v442_v4  ;;  %367 = vmatpush3.msra.mxu0 %v136_v33  ;;  %v329_v47 = vld [vmem:[%s594_s7] ss:$0 sm:$0xff] }
   0xd   :  { %420 = vmatpush3.bf16.msra.mxu1 %v419_v17  ;;  %v330_v53 = vld [vmem:[%s595_s8] ss:$0 sm:$0xff] }
   0xe   :  { %421 = vmatprep.subr.bf16.mxu1 %v440_v0 }
   0xf   :  { %369 = vmatmul.mubr.msk.f32.vlgmr.msra.gmra.mrb[2].mxu0 %vm137_vm2, %v33_v34 }
  0x11   :  { %423 = vmatpush3.bf16.msra.mxu1 %v422_v20 }
  0x12   :  { %424 = vmatprep.subr.bf16.mxu1 %v440_v0 }
  0x15   :  { %426 = vmatpush3.bf16.msra.mxu1 %v425_v23 }
  0x16   :  { %427 = vmatprep.subr.bf16.mxu1 %v440_v0 }
  0x19   :  { %429 = vmatpush3.bf16.msra.mxu1 %v428_v26 }
  0x1a   :  { %430 = vmatprep.subr.bf16.mxu1 %v440_v0 }
  0x1d   :  { %432 = vmatpush3.bf16.msra.mxu1 %v431_v29 }
  0x1e   :  { %433 = vmatprep.subr.bf16.mxu1 %v440_v0 }
  0x21   :  { %435 = vmatpush3.bf16.msra.mxu1 %v434_v32 }
  0xde   :  { %v115_v36 = vpop.f32.mrb[0].mxu0 }
  0xdf   :  { %v116_v37 = vadd.f32 %v325_v35, %v115_v36  ;;  %v365_v38 = vpop.f32.mrb[1].mxu0 }
  0xe1   :  { %v119_v39 = vmax.f32 %v116_v37, 0.0 }
  0xe2   :  { %v207_v40 = vpop.f32.mrb[2].mxu0 }
  0xe3   :  { %404 = vmatmul.mubr.f32.vlgmr.msra.gmra.mrb[0].mxu1 %v119_v39  ;;  %v370_v41 = vpop.f32.mrb[3].mxu0 }
 0x1b6   :  { %v277_v42 = vpop.f32.mrb[0].mxu1 }
 0x1b7   :  { %v278_v44 = vadd.f32 %v277_v42, %v207_v40  ;;  %v405_v45 = vpop.f32.mrb[1].mxu1 }
 0x1b9   :  { %v288_v46 = vadd.f32 %v328_v43, %v278_v44 }
 0x1bb   :  { %v289_v48 = vmax.f32 %v288_v46, 0.0 }
 0x1bd   :  { %v297_v49 = vmul.f32 %v329_v47, %v289_v48 }
 0x1bf   :  { %312 = vrot.lane.b32.xlu0 %v297_v49, %s443_s3  ;;  %v299_v50 = vsel %vm45_vm1, %v297_v49, 0.0 }
 0x1de   :  { %300 = vadd.xlane.f32.xlu0 %v299_v50 }
 0x231   :  { %v313_v51 = vpop.permute.xlu0 %312 }
 0x232   :  { %v315_v52 = vsel %vm45_vm1, %v313_v51, 0.0 }
 0x233   :  { %316 = vadd.xlane.f32.xlu1 %v315_v52 }
 0x26b   :  { %v301_v54 = vpop.xlane.xlu0 %300 }
 0x26c   :  { %v308_v55 = vadd.f32 %v330_v53, %v301_v54 }
 0x26e   :  { %310 = vst.msk [vmem:[%s596_s9] sm:$0xff] %vm309_vm3, %v308_v55 }
 0x2c0   :  { %v317_v56 = vpop.xlane.xlu1 %316 }
 0x2c1   :  { %v318_v57 = vadd.f32 %v330_v53, %v317_v56 }
 0x2c3   :  { %320 = vst.msk [vmem:[%s596_s9] sm:$0xff] %vm319_vm4, %v318_v57 }

</bundles_post_ra>
